<compile_context>
chip_gen: v5e
topology: v5e:2x2
jax: 0.10.0
libtpu: 0.0.40
codegen_flags: <defaults>
</compile_context>

<pallas_src>
import functools

import jax
import jax.numpy as jnp
from jax import lax
from jax.experimental import pallas as pl
from jax.experimental.pallas import tpu as pltpu


def _se_kernel(x_ref, w1_ref, b1_ref, w2_ref, b2_ref, o_ref, *, H, W, C, Hc):
    """x_ref/o_ref: (H, W*C) lane-dense slab for one image."""
    WC = W * C
    n_chunks = H // Hc
    inv_hw = jnp.float32(1.0 / (H * W))

    # ---- pass 1: pooled sum over H, chunked so vreg pressure stays bounded.
    def sum_body(i, acc):
        h0 = pl.multiple_of(i * Hc, Hc)
        chunk = x_ref[pl.ds(h0, Hc), :].astype(jnp.float32)        # (Hc, W*C)
        return acc + jnp.sum(chunk, axis=0, keepdims=True)          # (1, W*C)

    col_sum = lax.fori_loop(0, n_chunks, sum_body,
                            jnp.zeros((1, WC), jnp.float32), unroll=True)

    # Fold W back out of the lane dim: pooled[c] = sum_w col_sum[w*C + c].
    # Static lane slices + adds (pure VPU; avoids a lane->sublane reshape).
    pooled = col_sum[:, 0:C]
    for w in range(1, W):
        pooled = pooled + col_sum[:, w * C:(w + 1) * C]
    sq = pooled * inv_hw                                            # (1, C) mean

    # ---- excitation MLP (tiny; negligible cost, f32 accumulation).
    h = jnp.dot(sq, w1_ref[...], preferred_element_type=jnp.float32) + b1_ref[...]
    h = jnp.maximum(h, 0.0)
    s = jnp.dot(h, w2_ref[...], preferred_element_type=jnp.float32) + b2_ref[...]
    s = jax.nn.sigmoid(s)                                           # (1, C)

    # Lane-tile the per-channel scale to match the folded (W*C) layout.
    s_wide = jnp.concatenate([s] * W, axis=-1)                      # (1, W*C)

    # ---- pass 2: re-read chunks (from VMEM), scale, lane-dense store.
    def scale_body(i, carry):
        h0 = pl.multiple_of(i * Hc, Hc)
        chunk = x_ref[pl.ds(h0, Hc), :].astype(jnp.float32)
        o_ref[pl.ds(h0, Hc), :] = (chunk * s_wide).astype(o_ref.dtype)
        return carry

    lax.fori_loop(0, n_chunks, scale_body, 0, unroll=True)


def se_layer(x, w1, b1, w2, b2):
    """x: (B, H, W, C); w1: (C, Cr); b1: (Cr,); w2: (Cr, C); b2: (C,)."""
    B, H, W, C = x.shape
    Cr = w1.shape[1]
    WC = W * C

    # Lane-dense layout: fold W into the last (lane) dimension wrapper-side.
    x2 = x.reshape(B, H, WC)
    b1_2d = b1.reshape(1, Cr)
    b2_2d = b2.reshape(1, C)

    # H-chunk for the in-kernel loops (sublane aligned when possible).
    Hc = 8 if H % 8 == 0 else H

    # Explicit VMEM budget: double-buffered in + out tiles, weights, headroom.
    itemsize = jnp.dtype(x.dtype).itemsize
    tile_bytes = H * WC * itemsize
    weight_bytes = 4 * (w1.size + w2.size + Cr + C)
    vmem_limit = int(min(100 * 1024 * 1024,
                         max(4 * 1024 * 1024,
                             4 * tile_bytes + weight_bytes + 2 * 1024 * 1024)))
    # TODO(synk): for very large images (2*in + 2*out tile > ~40 MiB on v7x's
    # 64 MiB VMEM) add a spatial grid split with a two-pass reduce/scale.

    kernel = functools.partial(_se_kernel, H=H, W=W, C=C, Hc=Hc)

    out2 = pl.pallas_call(
        kernel,
        out_shape=jax.ShapeDtypeStruct((B, H, WC), x.dtype),
        grid_spec=pltpu.PrefetchScalarGridSpec(
            num_scalar_prefetch=0,
            grid=(B,),
            in_specs=[
                pl.BlockSpec((None, H, WC), lambda b: (b, 0, 0)),   # x slab
                pl.BlockSpec((C, Cr), lambda b: (0, 0)),            # w1
                pl.BlockSpec((1, Cr), lambda b: (0, 0)),            # b1
                pl.BlockSpec((Cr, C), lambda b: (0, 0)),            # w2
                pl.BlockSpec((1, C), lambda b: (0, 0)),             # b2
            ],
            out_specs=pl.BlockSpec((None, H, WC), lambda b: (b, 0, 0)),
        ),
        compiler_params=pltpu.CompilerParams(
            dimension_semantics=("parallel",),
            vmem_limit_bytes=vmem_limit),
    )(x2, w1, b1_2d, w2, b2_2d)

    return out2.reshape(B, H, W, C)


def se_layer_ref(x, w1, b1, w2, b2):
    # Pure-JAX reference mirroring the PyTorch forward exactly.
    sq = jnp.mean(x.astype(jnp.float32), axis=(1, 2))          # (B, C)
    h = jnp.maximum(sq @ w1 + b1, 0.0)                         # (B, Cr)
    s = jax.nn.sigmoid(h @ w2 + b2)                            # (B, C)
    return x.astype(jnp.float32) * s[:, None, None, :]


if __name__ == "__main__":
    B, H, W, C = 2, 16, 16, 32
    reduction = 16
    Cr = C // reduction                            # hidden = 2

    key = jax.random.PRNGKey(0)
    kx, k1, k2, k3, k4 = jax.random.split(key, 5)

    x = jax.random.normal(kx, (B, H, W, C), dtype=jnp.float32)
    # PyTorch Linear params (fc1 C->Cr, fc2 Cr->C), stored transposed so the
    # kernel computes x @ W + b.
    w1 = jax.random.normal(k1, (C, Cr), dtype=jnp.float32) * (1.0 / jnp.sqrt(C))
    b1 = jax.random.normal(k2, (Cr,), dtype=jnp.float32) * 0.01
    w2 = jax.random.normal(k3, (Cr, C), dtype=jnp.float32) * (1.0 / jnp.sqrt(Cr))
    b2 = jax.random.normal(k4, (C,), dtype=jnp.float32) * 0.01

    # f32 path (matches PyTorch defaults) — strict check.
    out = jax.block_until_ready(se_layer(x, w1, b1, w2, b2))
    ref = se_layer_ref(x, w1, b1, w2, b2)
    assert out.shape == x.shape and out.dtype == x.dtype
    assert jnp.allclose(out, ref, atol=1e-5, rtol=1e-5)

    # bf16 activations (halved HBM traffic) — f32-accumulated, loose check.
    x_bf = x.astype(jnp.bfloat16)
    out_bf = jax.block_until_ready(se_layer(x_bf, w1, b1, w2, b2))
    ref_bf = se_layer_ref(x_bf, w1, b1, w2, b2)
    assert out_bf.shape == x.shape and out_bf.dtype == jnp.bfloat16
    assert jnp.allclose(out_bf.astype(jnp.float32), ref_bf, atol=2e-2, rtol=2e-2)

    print("KERNEL_OK")
</pallas_src>

<mosaic_0001>
module attributes {stable_mosaic.version = 11 : i64} {
  func.func @_se_kernel(%arg0: i32, %arg1: memref<1x16x512xf32, #tpu.memory_space<vmem>>, %arg2: memref<32x2xf32, #tpu.memory_space<vmem>>, %arg3: memref<1x2xf32, #tpu.memory_space<vmem>>, %arg4: memref<2x32xf32, #tpu.memory_space<vmem>>, %arg5: memref<1x32xf32, #tpu.memory_space<vmem>>, %arg6: memref<1x16x512xf32, #tpu.memory_space<vmem>>) attributes {dimension_semantics = [#tpu.dimension_semantics<parallel>], iteration_bounds = array<i64: 2>, scalar_prefetch = 0 : i64, scratch_operands = 0 : i64, tpu.core_type = #tpu.core_type<tc>, window_params = [{transform_indices = @transform_0, window_bounds = array<i64: 1, 16, 512>}, {pipeline_mode = #tpu.pipeline_mode<synchronous>, transform_indices = @transform_1, window_bounds = array<i64: 32, 2>}, {pipeline_mode = #tpu.pipeline_mode<synchronous>, transform_indices = @transform_2, window_bounds = array<i64: 1, 2>}, {pipeline_mode = #tpu.pipeline_mode<synchronous>, transform_indices = @transform_3, window_bounds = array<i64: 2, 32>}, {pipeline_mode = #tpu.pipeline_mode<synchronous>, transform_indices = @transform_4, window_bounds = array<i64: 1, 32>}, {transform_indices = @transform_5, window_bounds = array<i64: 1, 16, 512>}]} {
    %cst = arith.constant 0.000000e+00 : f32
    %0 = vector.broadcast %cst : f32 to vector<1x512xf32>
    %c0_i32 = arith.constant 0 : i32
    %c8_i32 = arith.constant 8 : i32
    %1 = arith.muli %c0_i32, %c8_i32 : i32
    %2 = tpu.assume_multiple %1, 8 : i32
    %c0 = arith.constant 0 : index
    %3 = arith.index_cast %2 : i32 to index
    %c0_0 = arith.constant 0 : index
    %4 = vector.load %arg1[%c0, %3, %c0_0] : memref<1x16x512xf32, #tpu.memory_space<vmem>>, vector<1x8x512xf32>
    %5 = vector.shape_cast %4 : vector<1x8x512xf32> to vector<8x512xf32>
    %cst_1 = arith.constant dense<0.000000e+00> : vector<512xf32>
    %6 = vector.multi_reduction <add>, %5, %cst_1 [0] : vector<8x512xf32> to vector<512xf32>
    %7 = vector.shape_cast %6 : vector<512xf32> to vector<1x512xf32>
    %8 = arith.addf %0, %7 : vector<1x512xf32>
    %c1_i32 = arith.constant 1 : i32
    %c8_i32_2 = arith.constant 8 : i32
    %9 = arith.muli %c1_i32, %c8_i32_2 : i32
    %10 = tpu.assume_multiple %9, 8 : i32
    %c0_3 = arith.constant 0 : index
    %11 = arith.index_cast %10 : i32 to index
    %c0_4 = arith.constant 0 : index
    %12 = vector.load %arg1[%c0_3, %11, %c0_4] : memref<1x16x512xf32, #tpu.memory_space<vmem>>, vector<1x8x512xf32>
    %13 = vector.shape_cast %12 : vector<1x8x512xf32> to vector<8x512xf32>
    %cst_5 = arith.constant dense<0.000000e+00> : vector<512xf32>
    %14 = vector.multi_reduction <add>, %13, %cst_5 [0] : vector<8x512xf32> to vector<512xf32>
    %15 = vector.shape_cast %14 : vector<512xf32> to vector<1x512xf32>
    %16 = arith.addf %8, %15 : vector<1x512xf32>
    %c2_i32 = arith.constant 2 : i32
    %17 = vector.extract_strided_slice %16 {offsets = [0, 0], sizes = [1, 32], strides = [1, 1]} : vector<1x512xf32> to vector<1x32xf32>
    %18 = vector.extract_strided_slice %16 {offsets = [0, 32], sizes = [1, 32], strides = [1, 1]} : vector<1x512xf32> to vector<1x32xf32>
    %19 = arith.addf %17, %18 : vector<1x32xf32>
    %20 = vector.extract_strided_slice %16 {offsets = [0, 64], sizes = [1, 32], strides = [1, 1]} : vector<1x512xf32> to vector<1x32xf32>
    %21 = arith.addf %19, %20 : vector<1x32xf32>
    %22 = vector.extract_strided_slice %16 {offsets = [0, 96], sizes = [1, 32], strides = [1, 1]} : vector<1x512xf32> to vector<1x32xf32>
    %23 = arith.addf %21, %22 : vector<1x32xf32>
    %24 = vector.extract_strided_slice %16 {offsets = [0, 128], sizes = [1, 32], strides = [1, 1]} : vector<1x512xf32> to vector<1x32xf32>
    %25 = arith.addf %23, %24 : vector<1x32xf32>
    %26 = vector.extract_strided_slice %16 {offsets = [0, 160], sizes = [1, 32], strides = [1, 1]} : vector<1x512xf32> to vector<1x32xf32>
    %27 = arith.addf %25, %26 : vector<1x32xf32>
    %28 = vector.extract_strided_slice %16 {offsets = [0, 192], sizes = [1, 32], strides = [1, 1]} : vector<1x512xf32> to vector<1x32xf32>
    %29 = arith.addf %27, %28 : vector<1x32xf32>
    %30 = vector.extract_strided_slice %16 {offsets = [0, 224], sizes = [1, 32], strides = [1, 1]} : vector<1x512xf32> to vector<1x32xf32>
    %31 = arith.addf %29, %30 : vector<1x32xf32>
    %32 = vector.extract_strided_slice %16 {offsets = [0, 256], sizes = [1, 32], strides = [1, 1]} : vector<1x512xf32> to vector<1x32xf32>
    %33 = arith.addf %31, %32 : vector<1x32xf32>
    %34 = vector.extract_strided_slice %16 {offsets = [0, 288], sizes = [1, 32], strides = [1, 1]} : vector<1x512xf32> to vector<1x32xf32>
    %35 = arith.addf %33, %34 : vector<1x32xf32>
    %36 = vector.extract_strided_slice %16 {offsets = [0, 320], sizes = [1, 32], strides = [1, 1]} : vector<1x512xf32> to vector<1x32xf32>
    %37 = arith.addf %35, %36 : vector<1x32xf32>
    %38 = vector.extract_strided_slice %16 {offsets = [0, 352], sizes = [1, 32], strides = [1, 1]} : vector<1x512xf32> to vector<1x32xf32>
    %39 = arith.addf %37, %38 : vector<1x32xf32>
    %40 = vector.extract_strided_slice %16 {offsets = [0, 384], sizes = [1, 32], strides = [1, 1]} : vector<1x512xf32> to vector<1x32xf32>
    %41 = arith.addf %39, %40 : vector<1x32xf32>
    %42 = vector.extract_strided_slice %16 {offsets = [0, 416], sizes = [1, 32], strides = [1, 1]} : vector<1x512xf32> to vector<1x32xf32>
    %43 = arith.addf %41, %42 : vector<1x32xf32>
    %44 = vector.extract_strided_slice %16 {offsets = [0, 448], sizes = [1, 32], strides = [1, 1]} : vector<1x512xf32> to vector<1x32xf32>
    %45 = arith.addf %43, %44 : vector<1x32xf32>
    %46 = vector.extract_strided_slice %16 {offsets = [0, 480], sizes = [1, 32], strides = [1, 1]} : vector<1x512xf32> to vector<1x32xf32>
    %47 = arith.addf %45, %46 : vector<1x32xf32>
    %cst_6 = arith.constant 3.906250e-03 : f32
    %48 = vector.broadcast %cst_6 : f32 to vector<1x32xf32>
    %49 = arith.mulf %47, %48 : vector<1x32xf32>
    %c0_7 = arith.constant 0 : index
    %c0_8 = arith.constant 0 : index
    %50 = vector.load %arg2[%c0_7, %c0_8] : memref<32x2xf32, #tpu.memory_space<vmem>>, vector<32x2xf32>
    %cst_9 = arith.constant dense<0.000000e+00> : vector<1x2xf32>
    %51 = tpu.matmul %49, %50, %cst_9 {dimension_numbers = #tpu.dot_dimension_numbers<[1], [0], [0], [1], [0, 0, 1, 1], [], []>} : vector<1x32xf32>, vector<32x2xf32>, vector<1x2xf32> -> vector<1x2xf32>
    %c0_10 = arith.constant 0 : index
    %c0_11 = arith.constant 0 : index
    %52 = vector.load %arg3[%c0_10, %c0_11] : memref<1x2xf32, #tpu.memory_space<vmem>>, vector<1x2xf32>
    %53 = arith.addf %51, %52 : vector<1x2xf32>
    %cst_12 = arith.constant 0.000000e+00 : f32
    %54 = vector.broadcast %cst_12 : f32 to vector<1x2xf32>
    %55 = arith.maximumf %53, %54 : vector<1x2xf32>
    %c0_13 = arith.constant 0 : index
    %c0_14 = arith.constant 0 : index
    %56 = vector.load %arg4[%c0_13, %c0_14] : memref<2x32xf32, #tpu.memory_space<vmem>>, vector<2x32xf32>
    %cst_15 = arith.constant dense<0.000000e+00> : vector<1x32xf32>
    %57 = tpu.matmul %55, %56, %cst_15 {dimension_numbers = #tpu.dot_dimension_numbers<[1], [0], [0], [1], [0, 0, 1, 1], [], []>} : vector<1x2xf32>, vector<2x32xf32>, vector<1x32xf32> -> vector<1x32xf32>
    %c0_16 = arith.constant 0 : index
    %c0_17 = arith.constant 0 : index
    %58 = vector.load %arg5[%c0_16, %c0_17] : memref<1x32xf32, #tpu.memory_space<vmem>>, vector<1x32xf32>
    %59 = arith.addf %57, %58 : vector<1x32xf32>
    %60 = arith.negf %59 : vector<1x32xf32>
    %61 = math.exp %60 : vector<1x32xf32>
    %cst_18 = arith.constant 1.000000e+00 : f32
    %62 = vector.broadcast %cst_18 : f32 to vector<1x32xf32>
    %63 = arith.addf %62, %61 : vector<1x32xf32>
    %64 = arith.divf %62, %63 : vector<1x32xf32>
    %65 = tpu.concatenate %64, %64, %64, %64, %64, %64, %64, %64, %64, %64, %64, %64, %64, %64, %64, %64 in 1 : vector<1x32xf32>, vector<1x32xf32>, vector<1x32xf32>, vector<1x32xf32>, vector<1x32xf32>, vector<1x32xf32>, vector<1x32xf32>, vector<1x32xf32>, vector<1x32xf32>, vector<1x32xf32>, vector<1x32xf32>, vector<1x32xf32>, vector<1x32xf32>, vector<1x32xf32>, vector<1x32xf32>, vector<1x32xf32> -> vector<1x512xf32>
    %c0_i32_19 = arith.constant 0 : i32
    %c8_i32_20 = arith.constant 8 : i32
    %66 = arith.muli %c0_i32_19, %c8_i32_20 : i32
    %67 = tpu.assume_multiple %66, 8 : i32
    %c0_21 = arith.constant 0 : index
    %68 = arith.index_cast %67 : i32 to index
    %c0_22 = arith.constant 0 : index
    %69 = vector.load %arg1[%c0_21, %68, %c0_22] : memref<1x16x512xf32, #tpu.memory_space<vmem>>, vector<1x8x512xf32>
    %70 = vector.shape_cast %69 : vector<1x8x512xf32> to vector<8x512xf32>
    %71 = vector.broadcast %65 : vector<1x512xf32> to vector<8x512xf32>
    %72 = arith.mulf %70, %71 : vector<8x512xf32>
    %c0_23 = arith.constant 0 : index
    %73 = arith.index_cast %67 : i32 to index
    %c0_24 = arith.constant 0 : index
    %74 = vector.load %arg6[%c0_23, %73, %c0_24] : memref<1x16x512xf32, #tpu.memory_space<vmem>>, vector<1x8x512xf32>
    %75 = vector.shape_cast %74 : vector<1x8x512xf32> to vector<8x512xf32>
    %76 = vector.shape_cast %72 : vector<8x512xf32> to vector<1x8x512xf32>
    tpu.vector_store %arg6[%c0_23, %73, %c0_24], %76 {strides = array<i32>} : memref<1x16x512xf32, #tpu.memory_space<vmem>>, vector<1x8x512xf32>,
    %c1_i32_25 = arith.constant 1 : i32
    %c8_i32_26 = arith.constant 8 : i32
    %77 = arith.muli %c1_i32_25, %c8_i32_26 : i32
    %78 = tpu.assume_multiple %77, 8 : i32
    %c0_27 = arith.constant 0 : index
    %79 = arith.index_cast %78 : i32 to index
    %c0_28 = arith.constant 0 : index
    %80 = vector.load %arg1[%c0_27, %79, %c0_28] : memref<1x16x512xf32, #tpu.memory_space<vmem>>, vector<1x8x512xf32>
    %81 = vector.shape_cast %80 : vector<1x8x512xf32> to vector<8x512xf32>
    %82 = vector.broadcast %65 : vector<1x512xf32> to vector<8x512xf32>
    %83 = arith.mulf %81, %82 : vector<8x512xf32>
    %c0_29 = arith.constant 0 : index
    %84 = arith.index_cast %78 : i32 to index
    %c0_30 = arith.constant 0 : index
    %85 = vector.load %arg6[%c0_29, %84, %c0_30] : memref<1x16x512xf32, #tpu.memory_space<vmem>>, vector<1x8x512xf32>
    %86 = vector.shape_cast %85 : vector<1x8x512xf32> to vector<8x512xf32>
    %87 = vector.shape_cast %83 : vector<8x512xf32> to vector<1x8x512xf32>
    tpu.vector_store %arg6[%c0_29, %84, %c0_30], %87 {strides = array<i32>} : memref<1x16x512xf32, #tpu.memory_space<vmem>>, vector<1x8x512xf32>,
    %c2_i32_31 = arith.constant 2 : i32
    return
  }
  func.func @transform_0(%arg0: i32) -> (i32, i32, i32) {
    %c0_i32 = arith.constant 0 : i32
    %c0_i32_0 = arith.constant 0 : i32
    %c0_i32_1 = arith.constant 0 : i32
    return %arg0, %c0_i32, %c0_i32_0 : i32, i32, i32
  }
  func.func @transform_1(%arg0: i32) -> (i32, i32) {
    %c0_i32 = arith.constant 0 : i32
    %c0_i32_0 = arith.constant 0 : i32
    %c0_i32_1 = arith.constant 0 : i32
    return %c0_i32, %c0_i32_0 : i32, i32
  }
  func.func @transform_2(%arg0: i32) -> (i32, i32) {
    %c0_i32 = arith.constant 0 : i32
    %c0_i32_0 = arith.constant 0 : i32
    %c0_i32_1 = arith.constant 0 : i32
    return %c0_i32, %c0_i32_0 : i32, i32
  }
  func.func @transform_3(%arg0: i32) -> (i32, i32) {
    %c0_i32 = arith.constant 0 : i32
    %c0_i32_0 = arith.constant 0 : i32
    %c0_i32_1 = arith.constant 0 : i32
    return %c0_i32, %c0_i32_0 : i32, i32
  }
  func.func @transform_4(%arg0: i32) -> (i32, i32) {
    %c0_i32 = arith.constant 0 : i32
    %c0_i32_0 = arith.constant 0 : i32
    %c0_i32_1 = arith.constant 0 : i32
    return %c0_i32, %c0_i32_0 : i32, i32
  }
  func.func @transform_5(%arg0: i32) -> (i32, i32, i32) {
    %c0_i32 = arith.constant 0 : i32
    %c0_i32_0 = arith.constant 0 : i32
    %c0_i32_1 = arith.constant 0 : i32
    return %arg0, %c0_i32, %c0_i32_0 : i32, i32, i32
  }
}

</mosaic_0001>

<bundles_post_ra>
// kernel: tpu_custom_call.1
= control target key start
LH: loop header
LB: loop body
LE: loop exit
PB: predicated region body
PF: predicated region fallthrough
CT: control target
= control target key end

     0   :  { %10 = vsyncpa [#allocation3], 0  ;;  %s1013_s0 = inlined_call_operand.hbm [shape: f32[2,16,512], index: 0, kind: input, shape index: {}]   ;;  %s1014_s1 = inlined_call_operand.vmem [shape: f32[32,2], index: 1, kind: input, shape index: {}]   ;;  %s1015_s2 = inlined_call_operand.vmem [shape: f32[1,2], index: 2, kind: input, shape index: {}]   ;;  %s1016_s3 = inlined_call_operand.vmem [shape: f32[2,32], index: 3, kind: input, shape index: {}]   ;;  %s1017_s4 = inlined_call_operand.vmem [shape: f32[1,32], index: 4, kind: input, shape index: {}]   ;;  %s1018_s5 = inlined_call_operand.hbm [shape: f32[2,16,512], index: 5, kind: output, shape index: {}]  }
   0x1   :  { %12 = vsyncpa [#allocation3 + $0x1], 0 }
   0x2   :  { %13 = vsyncpa [#allocation4], 0 }
   0x3   :  { %15 = vsyncpa [#allocation4 + $0x1], 0  ;;  %s803_s18 = smov 0   ;;  %s805_s19 = smov 0  }
   0x4   :  { %s807_s20 = smov 0   ;;  %s809_s21 = smov 0  }
   0x5 LB: > { %s824_s22 = sadd.s32 4294967295, %s765_s21   ;;  %s581_s23 = sadd.s32 4294967294, %s765_s21   ;;  %s765_s21 = sphi %s809_s21, %s1028_s21   ;;  %s761_s20 = sphi %s807_s20, %s1027_s20   ;;  %s757_s19 = sphi %s805_s19, %s1026_s19   ;;  %s753_s18 = sphi %s803_s18, %s1025_s18  }
   0x6   : > { %s828_s24 = sadd.s32 1, %s765_s21   ;;  %s28_s25 = sadd.s32 1, %s761_s20 }
   0x7   : > { %s25_s26 = ssub.s32 %s765_s21, %s828_s24  ;;  %p35_p0 = scmp.ne.s32.totalorder %s761_s20, %s757_s19 }
   0x8   : > { %p26_p1 = scmp.eq.s32.totalorder %s25_s26, 0  ;;  %p36_p2 = scmp.eq.s32.totalorder %s765_s21, 0 }
   0x9   : > { %p41_p3 = scmp.ne.s32.totalorder %s757_s19, %s753_s18  ;;  %p42_p4 = scmp.eq.s32.totalorder %s824_s22, 0 }
   0xa   : > { %s840_s27 = scalar_select %p26_p1, %s761_s20, %s28_s25  }
   0xb   : > { %p842_p5 = por %p36_p2, %p35_p0  ;;  %p846_p6 = por %p42_p4, %p41_p3 }
   0xc   : > { %p149_p7 = scmp.eq.s32.totalorder %s824_s22, 1  ;;  %p155_p8 = scmp.eq.s32.totalorder %s581_s23, 1 }
   0xd   : > { %p625_p10 = scmp.lt.s32.totalorder %s765_s21, 2  ;;  %s187_s7 = sand.u32 1, %s761_s20  }
   0xe   : > { %p853_p11 = por %p149_p7, %p35_p0  ;;  %p857_p12 = por %p155_p8, %p41_p3 }
   0xf   : > { %s611_s8 = sshll.u32 %s765_s21, 6  ;;  %s584_s9 = sshll.u32 %s187_s7, 6 }
  0x10   : > { %s196_s12 = scalar_lea.hbm %s1013_s0, %s611_s8  ;;  %s191_s14 = scalar_lea.vmem [#allocation2], %s584_s9 }
  0x11   : > { %s197_s13 = sshll.u32 %s196_s12, 4  ;;  %s199_s15 = sshll.u32 %s191_s14, 4  ;;  %s198_s13 = int_to_ptr.hbm [resolvable:$true] %s197_s13  ;;  %s200_s15 = int_to_ptr.vmem [resolvable:$true] %s199_s15 }
  0x12   : > { %p868_p13 = pnand %p625_p10, %p842_p5  ;;  %p587_p0 = scmp.ge.s32.totalorder %s765_s21, 1 }
  0x13   : > { %p207_p1 = scmp.lt.s32.totalorder %s765_s21, 3  ;;  %s188_s17 = scalar_lea.sflag [#allocation3], %s187_s7 }
  0x14   : > { %s669_s23 = sshra.s32 %s198_s13, 4  ;;  %p673_p3 = pneg %p868_p13  ;;  %s670_s23 = int_to_ptr.hbm [resolvable:$true] %s669_s23 }
  0x15   : > { %s671_s25 = scalar_lea.hbm %s670_s23, 64  ;;  %s676_s28 = scalar_lea.hbm %s1013_s0, 128 }
  0x16   : > { %p672_p2 = scmp.ne.s32.totalorder %s670_s23, %s671_s25  ;;  %p677_p5 = scmp.lt.s32.totalorder %s670_s23, %s1013_s0 }
  0x17   : > { %p678_p8 = scmp.lt.s32.totalorder %s676_s28, %s671_s25 }
  0x18   : > { %p674_p4 = pnand %p673_p3, %p672_p2 }
  0x19   : > { %p679_p10 = por %p678_p8, %p677_p5 }
  0x1a   : > { %p675_p7 = pneg %p674_p4 }
  0x1c   : > { %p680_p9 = pnand %p679_p10, %p675_p7 }
  0x1e   : > { %683 = shalt.err (!%p680_p9)
}
  0x1f   : > { %s767_s7 = smov 512   ;;  %s768_s11 = smov 32  }
  0x20   : > { %620 = dma.hbm_to_vmem [thread:$0]  (!%p868_p13), %s198_s13, 1024, %s200_s15, %s188_s17, %s767_s7, %s767_s7, %s768_s11  }
  0x21   : > { %p208_p2 = pnand %p587_p0, %p207_p1 }
  0x22   : > { %s889_s12 = sand.u32 (!%p208_p2), 1, %s757_s19  }
  0x23   : > { %211 = sbr.rel (%p208_p2) target bundleno = 630 (0x276), region = 40  ;;  %s588_s14 = sshll.u32 (!%p208_p2), %s889_s12, 6 }
  0x24   : > { %s214_s23 = scalar_lea.sflag (!%p208_p2), [#allocation3], %s889_s12  ;;  %s217_s25 = scalar_lea.vmem (!%p208_p2), [#allocation2], %s588_s14 }
  0x28   : > { %744 = dma.done.wait (%p846_p6), %s214_s23, 1024  }
  0x29   : > { %746 = vsyncadd (%p846_p6), %s214_s23, 4294966272  ;;  %v899_v0 = vld [vmem:[%s217_s25] sm:$0xff]  ;;  %v903_v2 = vld [vmem:[%s217_s25 + $0x8] sm:$0xff]  ;;  %s769_s29 = smov 96   ;;  %s770_s13 = smov 32   ;;  %vm376_vm0 = vcmask 261120  }
  0x2a   : > { %v901_v1 = vld [vmem:[%s217_s25 + $0x20] sm:$0xff]  ;;  %v252_v3 = vrot.slane %v899_v0, 4  ;;  %v258_v5 = vrot.slane %v903_v2, 4  ;;  %v908_v6 = vld [vmem:[%s217_s25 + $0x28] sm:$0xff]  ;;  %v910_v7 = vld [vmem:[%s217_s25 + $0x10] sm:$0xff]  ;;  %s771_s15 = smov 64  }
  0x2b   : > { %v287_v4 = vrot.slane %v901_v1, 4  ;;  %v912_v8 = vld [vmem:[%s217_s25 + $0x30] sm:$0xff]  ;;  %v293_v9 = vrot.slane %v908_v6, 4  ;;  %v264_v10 = vrot.slane %v910_v7, 4  ;;  %v923_v25 = vld [vmem:[%s217_s25 + $0x18] sm:$0xff]  ;;  %vm407_vm1 = vcmask 1041408  }
  0x2c   : > { %v253_v11 = vadd.f32 %v252_v3, %v899_v0  ;;  %v259_v13 = vadd.f32 %v258_v5, %v903_v2  ;;  %v299_v14 = vrot.slane %v912_v8, 4  ;;  %v925_v26 = vld [vmem:[%s217_s25 + $0x38] sm:$0xff]  ;;  %v270_v33 = vrot.slane %v923_v25, 4  ;;  %v373_v62 = vld [vmem:[%s1014_s1 + $0x10] sm:$0xff]  ;;  %v371_v5 = vld [vmem:[%s1014_s1] sm:$0xff]  ;;  %s612_s8 = sshll.u32 %s824_s22, 6 }
  0x2d   : > { %v288_v12 = vadd.f32 %v901_v1, %v287_v4  ;;  %v294_v15 = vadd.f32 %v908_v6, %v293_v9  ;;  %v265_v20 = vadd.f32 %v264_v10, %v910_v7  ;;  %v305_v34 = vrot.slane %v925_v26, 4  ;;  %v374_v60 = vld [vmem:[%s1014_s1 + $0x18] sm:$0xff]  ;;  %v372_v4 = vld [vmem:[%s1014_s1 + $0x8] sm:$0xff]  ;;  %s502_s28 = scalar_lea.hbm %s1018_s5, %s612_s8  ;;  %s244_s9 = scalar_lea.vmem [#allocation5], %s588_s14 }
  0x2e   : > { %v254_v16 = vrot.slane %v253_v11, 2  ;;  %v260_v18 = vrot.slane %v259_v13, 2  ;;  %v300_v24 = vadd.f32 %v912_v8, %v299_v14  ;;  %v271_v42 = vadd.f32 %v270_v33, %v923_v25  ;;  %392 = vmatpush.msra.mxu0 %v374_v60  ;;  %s503_s22 = sshll.u32 %s244_s9, 4  ;;  %s505_s10 = sshll.u32 %s502_s28, 4  ;;  %s504_s22 = int_to_ptr.vmem [resolvable:$true] %s503_s22  ;;  %s506_s10 = int_to_ptr.hbm [resolvable:$true] %s505_s10 }
  0x2f   : > { %v289_v17 = vrot.slane %v288_v12, 2  ;;  %v295_v19 = vrot.slane %v294_v15, 2  ;;  %v266_v32 = vrot.slane %v265_v20, 2  ;;  %v306_v45 = vadd.f32 %v925_v26, %v305_v34  ;;  %s491_s14 = scalar_lea.sflag [#allocation4], %s889_s12  ;;  %s713_s7 = sshra.s32 %s506_s10, 4  ;;  %s714_s7 = int_to_ptr.hbm [resolvable:$true] %s713_s7 }
  0x30   : > { %v255_v21 = vadd.f32 %v254_v16, %v253_v11  ;;  %v261_v23 = vadd.f32 %v260_v18, %v259_v13  ;;  %v301_v38 = vrot.slane %v300_v24, 2  ;;  %v272_v46 = vrot.slane %v271_v42, 2  ;;  %393 = vmatpush.msra.mxu0 %v373_v62  ;;  %s715_s11 = scalar_lea.hbm %s714_s7, 64  ;;  %s719_s16 = scalar_lea.hbm %s1018_s5, 128 }
  0x31   : > { %v290_v22 = vadd.f32 %v289_v17, %v288_v12  ;;  %v296_v27 = vadd.f32 %v295_v19, %v294_v15  ;;  %v267_v43 = vadd.f32 %v266_v32, %v265_v20  ;;  %v307_v49 = vrot.slane %v306_v45, 2  ;;  %p716_p6 = scmp.ne.s32.totalorder %s714_s7, %s715_s11  ;;  %p720_p0 = scmp.lt.s32.totalorder %s714_s7, %s1018_s5 }
  0x32   : > { %v256_v28 = vrot.slane %v255_v21, 1  ;;  %v262_v30 = vrot.slane %v261_v23, 1  ;;  %v302_v44 = vadd.f32 %v301_v38, %v300_v24  ;;  %v273_v50 = vadd.f32 %v272_v46, %v271_v42  ;;  %394 = vmatpush.msra.mxu0 %v372_v4  ;;  %p721_p1 = scmp.lt.s32.totalorder %s719_s16, %s715_s11 }
  0x33   : > { %v291_v29 = vrot.slane %v290_v22, 1  ;;  %v297_v31 = vrot.slane %v296_v27, 1  ;;  %v268_v47 = vrot.slane %v267_v43, 1  ;;  %v308_v53 = vadd.f32 %v307_v49, %v306_v45  ;;  %p717_p9 = pnand %p716_p6, %p853_p11 }
  0x34   : > { %v257_v35 = vadd.f32 %v256_v28, %v255_v21  ;;  %v263_v37 = vadd.f32 %v262_v30, %v261_v23  ;;  %v303_v48 = vrot.slane %v302_v44, 1  ;;  %v274_v55 = vrot.slane %v273_v50, 1  ;;  %395 = vmatpush.msra.mxu0 %v371_v5  ;;  %p722_p3 = por %p721_p1, %p720_p0 }
  0x35   : > { %v292_v36 = vadd.f32 %v291_v29, %v290_v22  ;;  %v298_v39 = vadd.f32 %v297_v31, %v296_v27  ;;  %v269_v51 = vadd.f32 %v268_v47, %v267_v43  ;;  %v309_v56 = vrot.slane %v308_v53, 1  ;;  %p718_p13 = pneg %p717_p9 }
  0x36   : > { %v304_v52 = vadd.f32 %v303_v48, %v302_v44  ;;  %v275_v57 = vadd.f32 %v274_v55, %v273_v50  ;;  %vm403_vm2 = vcmask 15360   ;;  %vm461_vm7 = vcmask 523264  }
  0x37   : > { %v311_v40 = vadd.f32 %v292_v36, %v257_v35  ;;  %v312_v41 = vadd.f32 %v298_v39, %v263_v37  ;;  %v310_v58 = vadd.f32 %v309_v56, %v308_v53  ;;  %v401_v36 = vld [vmem:[%s1016_s3] sm:$0x3]  ;;  %vm463_vm8 = vcmask 785408   ;;  %p723_p4 = pnand %p722_p3, %p718_p13 }
  0x38   : > { %v313_v54 = vadd.f32 %v304_v52, %v269_v51  ;;  %595 = vmatpush.msk.msra.mxu1 %vm407_vm1, %v401_v36  ;;  %v375_v37 = vld [vmem:[%s1015_s2] sm:$0x1] }
  0x39   : > { %316 = vrot.lane.b32.xlu0 %v311_v40, %s769_s29  ;;  %324 = vrot.lane.b32.xlu1 %v311_v40, %s770_s13  ;;  %v314_v59 = vadd.f32 %v310_v58, %v275_v57 }
  0x3a   : > { %334 = vrot.lane.b32.xlu2 %v312_v41, %s771_s15 }
  0x41   : > { %320 = vrot.lane.b32.xlu0 %v311_v40, %s771_s15  ;;  %330 = vrot.lane.b32.xlu1 %v312_v41, %s769_s29 }
  0x42   : > { %338 = vrot.lane.b32.xlu2 %v312_v41, %s770_s13 }
  0x49   : > { %344 = vrot.lane.b32.xlu0 %v313_v54, %s769_s29  ;;  %348 = vrot.lane.b32.xlu1 %v313_v54, %s771_s15 }
  0x4a   : > { %352 = vrot.lane.b32.xlu2 %v313_v54, %s770_s13 }
  0x51   : > { %358 = vrot.lane.b32.xlu0 %v314_v59, %s769_s29  ;;  %362 = vrot.lane.b32.xlu1 %v314_v59, %s771_s15 }
  0x52   : > { %366 = vrot.lane.b32.xlu2 %v314_v59, %s770_s13 }
  0x94   : > { %v335_v3 = vpop.permute.xlu2 %334 }
  0x9c   : > { %v339_v14 = vpop.permute.xlu2 %338 }
  0xa4   : > { %v353_v22 = vpop.permute.xlu2 %352 }
  0xab   : > { %v317_v61 = vpop.permute.xlu0 %316  ;;  %v325_v63 = vpop.permute.xlu1 %324 }
  0xac   : > { %v319_v9 = vadd.f32 %v317_v61, %v311_v40  ;;  %v367_v32 = vpop.permute.xlu2 %366 }
  0xb3   : > { %v321_v10 = vpop.permute.xlu0 %320  ;;  %v331_v13 = vpop.permute.xlu1 %330 }
  0xb4   : > { %v323_v11 = vadd.f32 %v321_v10, %v319_v9 }
  0xb6   : > { %v327_v12 = vadd.f32 %v325_v63, %v323_v11 }
  0xb8   : > { %v328_v15 = vadd.f32 %v327_v12, %v312_v41  ;;  %v402_v41 = vld [vmem:[%s1017_s4] sm:$0x1] }
  0xba   : > { %v333_v16 = vadd.f32 %v331_v13, %v328_v15 }
  0xbb   : > { %v345_v18 = vpop.permute.xlu0 %344  ;;  %v349_v20 = vpop.permute.xlu1 %348 }
  0xbc   : > { %v337_v17 = vadd.f32 %v335_v3, %v333_v16 }
  0xbe   : > { %v341_v19 = vadd.f32 %v339_v14, %v337_v17 }
  0xc0   : > { %v342_v21 = vadd.f32 %v341_v19, %v313_v54 }
  0xc2   : > { %v347_v23 = vadd.f32 %v345_v18, %v342_v21 }
  0xc3   : > { %v359_v28 = vpop.permute.xlu0 %358  ;;  %v363_v30 = vpop.permute.xlu1 %362 }
  0xc4   : > { %v351_v24 = vadd.f32 %v349_v20, %v347_v23 }
  0xc6   : > { %v355_v27 = vadd.f32 %v353_v22, %v351_v24 }
  0xc8   : > { %v356_v29 = vadd.f32 %v355_v27, %v314_v59 }
  0xca   : > { %v361_v31 = vadd.f32 %v359_v28, %v356_v29 }
  0xcc   : > { %v365_v33 = vadd.f32 %v363_v30, %v361_v31 }
  0xce   : > { %v369_v34 = vadd.f32 %v367_v32, %v365_v33 }
  0xd0   : > { %v370_v35 = vmul.f32 0.00390625, %v369_v34 }
  0xd2   : > { %594 = vmatmul.msk.f32.vlgmr.msra.gmra.mxu0 %vm376_vm0, %v370_v35 }
 0x14f   : > { %v397_v38 = vpop.f32.mrf.mxu0 }
 0x150   : > { %v398_v39 = vadd.f32 %v397_v38, %v375_v37 }
 0x152   : > { %v400_v40 = vmax.f32 %v398_v39, 0.0 }
 0x154   : > { %596 = vmatmul.msk.f32.vlgmr.msra.gmra.mxu1 %vm403_vm2, %v400_v40 }
 0x1d1   : > { %v428_v42 = vpop.f32.mrf.mxu1 }
 0x1d2   : > { %v429_v43 = vadd.f32 %v428_v42, %v402_v41 }
 0x1d4   : > { %v597_v44 = vmul.f32 -1.442695, %v429_v43 }
 0x1d6   : > { %665 = vpow2.f32 %v597_v44 }
 0x1dc   : > { %v666_v45 = vpop.eup %665 }
 0x1dd   : > { %v434_v46 = vadd.f32 1.0, %v666_v45 }
 0x1df   : > { %667 = vrcp.f32 %v434_v46  ;;  %v446_v50 = vand.u32 2147483648, %v434_v46  ;;  %v444_v52 = vand.u32 2147483647, %v434_v46  ;;  %vm440_vm4 = vweird.f32 %v434_v46 }
 0x1e1   : > { %v447_v54 = vor.u32 1.1754944e-38, %v446_v50  ;;  %vm445_vm6 = vcmp.eq.f32.partialorder %v444_v52, 8.507059e+37 }
 0x1e5   : > { %v668_v47 = vpop.eup %667 }
 0x1e6   : > { %v436_v48 = vmul.f32 %v668_v47, %v434_v46  ;;  %vm441_vm3 = vweird.f32 %v668_v47 }
 0x1e7   : > { %vm442_vm5 = vmor %vm440_vm4, %vm441_vm3 }
 0x1e8   : > { %v437_v49 = vsub.f32 1.0, %v436_v48 }
 0x1ea   : > { %v438_v51 = vmul.f32 %v668_v47, %v437_v49 }
 0x1ec   : > { %v439_v53 = vadd.f32 %v668_v47, %v438_v51 }
 0x1ee   : > { %v443_v55 = vsel %vm442_vm5, %v668_v47, %v439_v53 }
 0x1ef   : > { %v448_v56 = vsel %vm445_vm6, %v447_v54, %v443_v55 }
 0x1f0   : > { %457 = vrot.lane.b32.xlu2 %v448_v56, %s769_s29  ;;  %454 = vrot.lane.b32.xlu1 %v448_v56, %s771_s15 }
 0x1f1   : > { %451 = vrot.lane.b32.xlu0 %v448_v56, %s770_s13 }
 0x24a   : > { %v458_v60 = vpop.permute.xlu2 %457 }
 0x262   : > { %v455_v57 = vpop.permute.xlu1 %454 }
 0x263   : > { %v452_v58 = vpop.permute.xlu0 %451 }
 0x264   : > { %v460_v59 = vsel %vm376_vm0, %v448_v56, %v452_v58 }
 0x265   : > { %v462_v61 = vsel %vm461_vm7, %v460_v59, %v455_v57 }
 0x266   : > { %v464_v62 = vsel %vm463_vm8, %v462_v61, %v458_v60 }
 0x267   : > { %v465_v63 = vperm.slane %v464_v62, 0 }
 0x269   : > { %v466_v3 = vmul.f32 %v465_v63, %v899_v0  ;;  %v467_v4 = vmul.f32 %v465_v63, %v903_v2  ;;  %v468_v5 = vmul.f32 %v465_v63, %v910_v7  ;;  %v469_v9 = vmul.f32 %v465_v63, %v923_v25 }
 0x26a   : > { %v480_v10 = vmul.f32 %v901_v1, %v465_v63  ;;  %v481_v11 = vmul.f32 %v908_v6, %v465_v63  ;;  %v482_v0 = vmul.f32 %v912_v8, %v465_v63  ;;  %v483_v2 = vmul.f32 %v925_v26, %v465_v63 }
 0x26b   : > { %472 = vst [vmem:[%s244_s9] sm:$0xff] %v466_v3 }
 0x26c   : > { %473 = vst [vmem:[%s244_s9 + $0x8] sm:$0xff] %v467_v4 }
 0x26d   : > { %474 = vst [vmem:[%s244_s9 + $0x10] sm:$0xff] %v468_v5 }
 0x26e   : > { %475 = vst [vmem:[%s244_s9 + $0x18] sm:$0xff] %v469_v9 }
 0x26f   : > { %602 = vst [vmem:[%s244_s9 + $0x20] sm:$0xff] %v480_v10 }
 0x270   : > { %603 = vst [vmem:[%s244_s9 + $0x28] sm:$0xff] %v481_v11 }
 0x271   : > { %604 = vst [vmem:[%s244_s9 + $0x30] sm:$0xff] %v482_v0 }
 0x272   : > { %605 = vst [vmem:[%s244_s9 + $0x38] sm:$0xff] %v483_v2 }
 0x273   : > { %726 = shalt.err (!%p723_p4)
}
 0x274   : > { %s772_s12 = smov 512  }
 0x275   : > { %615 = dma.vmem_to_hbm [thread:$0]  (%p853_p11), %s504_s22, 1024, %s506_s10, %s491_s14, %s772_s12, %s772_s12, %s770_s13  }
 0x276 PF: > { %s520_s8 = sand.u32 1, %s753_s18   ;;  %p1024_p7 = scmp.ge.s32.totalorder %s765_s21, 2 }
 0x277   : > { %s521_s29 = scalar_lea.sflag [#allocation4], %s520_s8 }
 0x278   : > { %p622_p5 = pnand %p1024_p7, %p857_p12 }
 0x27a   : > { %p623_p8 = pneg %p622_p5 }
 0x27c   : > { %748 = dma.done.wait (%p623_p8), %s521_s29, 1024  }
 0x27d   : > { %750 = vsyncadd (%p623_p8), %s521_s29, 4294966272  ;;  %p18_p10 = scmp.ge.s32.totalorder %s828_s24, 4   ;;  %s1025_s18 = smov %s757_s19 }
 0x27e   : > { %s1026_s19 = smov %s761_s20  ;;  %s1027_s20 = smov %s840_s27 }
 0x27f   : > { %s1028_s21 = smov %s828_s24  ;;  %20 = sbr.rel (!%p18_p10) target bundleno = 5 (0x5), region = 89 }
 0x284   :  { %527 = vsyncpa [#allocation3], 1 }
 0x285   :  { %529 = vsyncpa [#allocation3 + $0x1], 1 }
 0x286   :  { %530 = vsyncpa [#allocation4], 1 }
 0x287   :  { %532 = vsyncpa [#allocation4 + $0x1], 1 }

</bundles_post_ra>
